<compile_context>
chip_gen: v5e
topology: v5e:2x2
jax: 0.10.0
libtpu: 0.0.40
codegen_flags: <defaults>
</compile_context>

<pallas_src>
import functools

import jax
import jax.numpy as jnp
from jax.experimental import pallas as pl
from jax.experimental.pallas import tpu as pltpu


_LANE = 128                        # TPU vreg lane width
_MAX_TM = 512                      # cap on mode-tile width (lanes)
_CO_CHUNK = 8                      # f32 sublane tile: accumulators stay <= 8 rows
_VMEM_BUDGET = 24 * 1024 * 1024    # target for the double-buffered working set


def _round_up(n, m):
    return ((n + m - 1) // m) * m


def _choose_mode_tile(M, B, Ci, Co):
    """Pick the lane-tile width TM for the flattened (padded) mode axis.

    TM is a multiple of 128 that divides Mp = round_up(M, 128), as large as
    possible (<= _MAX_TM) while the double-buffered x/w/out tiles stay inside
    the VMEM budget.  If one >=512-wide tile would cover all modes it is split
    in two so the 'parallel' grid axis can shard across v7x's 2 TensorCores.
    """
    Mp = _round_up(M, _LANE)
    n = Mp // _LANE

    def footprint(tm):
        rows = (_round_up(B * Ci, 8) + _round_up(Ci * Co, 8)
                + _round_up(B * Co, 8))
        # 2 (real/imag planes) * 2 (double buffer) * rows * tm * 4 B (f32)
        return 2 * 2 * rows * tm * 4

    cands = [k * _LANE for k in range(min(_MAX_TM // _LANE, n), 0, -1)
             if n % k == 0]
    tm = next((c for c in cands if footprint(c) <= _VMEM_BUDGET), _LANE)
    if Mp // tm == 1 and tm >= 4 * _LANE:   # keep >=2 tiles for v7x megacore
        tm //= 2
    return tm, Mp


def _make_spectral_mix_kernel(B, Ci, Co):
    """Kernel over one mode tile.

    x_ref: (2, B*Ci, TM)  [0]=real, [1]=imag of gathered Fourier modes
    w_ref: (2, Ci*Co, TM) [0]=real, [1]=imag of the weights (row = i*Co + o)
    o_ref: (2, B*Co, TM)  mixed modes (row = b*Co + o)

    Per (batch, <=8-row Co chunk) the Ci loop accumulates the complex product
    directly into register-resident acc_r/acc_i; each term is 2 weight loads +
    2 tiny x-row loads + 4 mul + 4 add, with no (B, Co, TM) temporaries.
    """
    def kernel(x_ref, w_ref, o_ref):
        for b in range(B):
            for c0 in range(0, Co, _CO_CHUNK):
                cc = min(_CO_CHUNK, Co - c0)
                acc_r = None
                acc_i = None
                for i in range(Ci):
                    xrow = b * Ci + i
                    xr = x_ref[0, xrow:xrow + 1, :]      # (1, TM), bcast over cc
                    xi = x_ref[1, xrow:xrow + 1, :]
                    wrow = i * Co + c0
                    wr = w_ref[0, wrow:wrow + cc, :]     # (cc, TM)
                    wi = w_ref[1, wrow:wrow + cc, :]
                    pr = xr * wr - xi * wi
                    pi = xr * wi + xi * wr
                    acc_r = pr if acc_r is None else acc_r + pr
                    acc_i = pi if acc_i is None else acc_i + pi
                orow = b * Co + c0
                o_ref[0, orow:orow + cc, :] = acc_r
                o_ref[1, orow:orow + cc, :] = acc_i
    return kernel


def spectral_mix_pallas(x_packed, w_packed, B, Ci, Co, tm):
    """x_packed: (2, B*Ci, Mp) f32, w_packed: (2, Ci*Co, Mp) f32, Mp % tm == 0.

    Returns (2, B*Co, Mp) f32.  Zero-padded mode columns in both inputs stay
    zero in the output (the caller slices them off)."""
    Mp = x_packed.shape[-1]
    assert Mp % tm == 0
    rows = (_round_up(B * Ci, 8) + _round_up(Ci * Co, 8) + _round_up(B * Co, 8))
    working_set = 2 * 2 * rows * tm * 4
    # Raise v5e's 16 MiB default scoped limit; stay under v7x's 64 MiB physical.
    vmem_limit = min(max(32 << 20, working_set + (8 << 20)), 64 << 20)
    return pl.pallas_call(
        _make_spectral_mix_kernel(B, Ci, Co),
        out_shape=jax.ShapeDtypeStruct((2, B * Co, Mp), jnp.float32),
        grid=(Mp // tm,),
        in_specs=[
            pl.BlockSpec((2, B * Ci, tm), lambda t: (0, 0, t)),
            pl.BlockSpec((2, Ci * Co, tm), lambda t: (0, 0, t)),
        ],
        out_specs=pl.BlockSpec((2, B * Co, tm), lambda t: (0, 0, t)),
        compiler_params=pltpu.CompilerParams(
            dimension_semantics=("parallel",),
            vmem_limit_bytes=vmem_limit),
    )(x_packed, w_packed)


@functools.partial(jax.jit, static_argnames=("m1", "m2", "co", "tm"))
def _spectral_conv2d_forward(x, w_packed, *, m1, m2, co, tm):
    B, Ci, H, W = x.shape
    Wf = W // 2 + 1
    M = 2 * m1 * m2
    Mp = w_packed.shape[-1]

    # TODO(synk): rfft2/irfft2 have no Pallas TPU equivalent; kept in plain JAX.
    x_ft = jnp.fft.rfft2(x)                                      # (B, Ci, H, Wf) c64

    # Gather the retained low/high mode blocks; flattened modes stay LAST
    # (lane axis), real/imag are stacked so the kernel gets 2 f32 inputs.
    low = x_ft[:, :, :m1, :m2]
    high = x_ft[:, :, H - m1:, :m2]
    xm = jnp.concatenate([low, high], axis=2).reshape(B * Ci, M)
    x_packed = jnp.stack(
        [jnp.real(xm), jnp.imag(xm)], axis=0).astype(jnp.float32)
    x_packed = jnp.pad(x_packed, ((0, 0), (0, 0), (0, Mp - M)))

    o = spectral_mix_pallas(x_packed, w_packed, B, Ci, co, tm)   # (2, B*Co, Mp)
    out = (o[0, :, :M] + 1j * o[1, :, :M]).reshape(B, co, 2 * m1, m2)

    # Assemble out_ft by concatenate + pad (no scatter round trips).
    zero_mid = jnp.zeros((B, co, H - 2 * m1, m2), dtype=out.dtype)
    col = jnp.concatenate([out[:, :, :m1, :], zero_mid, out[:, :, m1:, :]],
                          axis=2)                                # (B, Co, H, m2)
    out_ft = jnp.pad(col, ((0, 0), (0, 0), (0, 0), (0, Wf - m2)))
    return jnp.fft.irfft2(out_ft, s=(H, W))                      # (B, Co, H, W) f32


class SpectralConv2d:
    def __init__(self, in_channels, out_channels, modes1, modes2, key):
        self.in_channels = in_channels
        self.out_channels = out_channels
        self.modes1 = modes1
        self.modes2 = modes2
        scale = 1.0 / (in_channels * out_channels)
        shape = (in_channels, out_channels, modes1, modes2)
        k1, k2, k3, k4 = jax.random.split(key, 4)
        # torch.rand(..., dtype=cfloat): real and imag each uniform in [0, 1)
        self.weights1 = (scale * (jax.random.uniform(k1, shape)
                                  + 1j * jax.random.uniform(k2, shape))
                         ).astype(jnp.complex64)
        self.weights2 = (scale * (jax.random.uniform(k3, shape)
                                  + 1j * jax.random.uniform(k4, shape))
                         ).astype(jnp.complex64)

        # Hoisted weight reformatting: concat low/high blocks, flatten modes to
        # the lane axis, flatten (Ci, Co) -> Ci*Co rows (keeps sublane
        # occupancy when channels < 8), split real/imag, zero-pad the modes to
        # a multiple of 128.  Only 2 planes (no precomputed wr+wi): the direct
        # 4-multiply product with a fused accumulator costs the same VALU ops
        # and saves a third of the weight DMA.
        M = 2 * modes1 * modes2
        Mp = _round_up(M, _LANE)
        w = jnp.concatenate([self.weights1, self.weights2], axis=2)
        w = w.reshape(in_channels * out_channels, M)
        w_packed = jnp.stack(
            [jnp.real(w), jnp.imag(w)], axis=0).astype(jnp.float32)
        self._w_packed = jnp.pad(w_packed, ((0, 0), (0, 0), (0, Mp - M)))
        self._M = M
        self._Mp = Mp

    def __call__(self, x):
        # x: (B, C_in, H, W) float32 [NCHW]
        B, Ci, H, W = x.shape
        assert Ci == self.in_channels
        assert H >= 2 * self.modes1, "low/high mode blocks would overlap"
        assert W // 2 + 1 >= self.modes2, "modes2 exceeds rfft width"
        tm, _ = _choose_mode_tile(self._M, B, Ci, self.out_channels)
        return _spectral_conv2d_forward(
            x, self._w_packed, m1=self.modes1, m2=self.modes2,
            co=self.out_channels, tm=tm)


def _reference_forward(module, x):
    """Pure-JAX reference matching the PyTorch semantics."""
    B, Ci, H, W = x.shape
    m1, m2 = module.modes1, module.modes2
    Co = module.out_channels
    Wf = W // 2 + 1
    x_ft = jnp.fft.rfft2(x)
    out_ft = jnp.zeros((B, Co, H, Wf), dtype=jnp.complex64)
    out_ft = out_ft.at[:, :, :m1, :m2].set(
        jnp.einsum('bixy,ioxy->boxy', x_ft[:, :, :m1, :m2], module.weights1))
    out_ft = out_ft.at[:, :, H - m1:, :m2].set(
        jnp.einsum('bixy,ioxy->boxy', x_ft[:, :, H - m1:, :m2], module.weights2))
    return jnp.fft.irfft2(out_ft, s=(H, W))


if __name__ == "__main__":
    key = jax.random.PRNGKey(0)
    kx, kw = jax.random.split(key)

    B, Cin, Cout, H, W = 2, 4, 4, 16, 16
    modes1, modes2 = 4, 4

    x = jax.random.normal(kx, (B, Cin, H, W), dtype=jnp.float32)
    module = SpectralConv2d(Cin, Cout, modes1, modes2, kw)

    y = module(x)
    y = jax.block_until_ready(y)

    y_ref = jax.block_until_ready(_reference_forward(module, x))
    assert y.shape == (B, Cout, H, W)
    assert jnp.allclose(y, y_ref, atol=1e-5, rtol=1e-5)

    print("KERNEL_OK")
</pallas_src>

<mosaic_0001>
module attributes {stable_mosaic.version = 11 : i64} {
  func.func @kernel(%arg0: i32, %arg1: memref<2x8x128xf32, #tpu.memory_space<vmem>>, %arg2: memref<2x16x128xf32, #tpu.memory_space<vmem>>, %arg3: memref<2x8x128xf32, #tpu.memory_space<vmem>>) attributes {dimension_semantics = [#tpu.dimension_semantics<parallel>], iteration_bounds = array<i64: 1>, scalar_prefetch = 0 : i64, scratch_operands = 0 : i64, tpu.core_type = #tpu.core_type<tc>, window_params = [{transform_indices = @transform_0, window_bounds = array<i64: 2, 8, 128>}, {transform_indices = @transform_1, window_bounds = array<i64: 2, 16, 128>}, {transform_indices = @transform_2, window_bounds = array<i64: 2, 8, 128>}]} {
    %c0 = arith.constant 0 : index
    %c0_0 = arith.constant 0 : index
    %c0_1 = arith.constant 0 : index
    %0 = vector.load %arg1[%c0, %c0_0, %c0_1] : memref<2x8x128xf32, #tpu.memory_space<vmem>>, vector<1x1x128xf32>
    %1 = vector.shape_cast %0 : vector<1x1x128xf32> to vector<1x128xf32>
    %c1 = arith.constant 1 : index
    %c0_2 = arith.constant 0 : index
    %c0_3 = arith.constant 0 : index
    %2 = vector.load %arg1[%c1, %c0_2, %c0_3] : memref<2x8x128xf32, #tpu.memory_space<vmem>>, vector<1x1x128xf32>
    %3 = vector.shape_cast %2 : vector<1x1x128xf32> to vector<1x128xf32>
    %c0_4 = arith.constant 0 : index
    %c0_5 = arith.constant 0 : index
    %c0_6 = arith.constant 0 : index
    %4 = vector.load %arg2[%c0_4, %c0_5, %c0_6] : memref<2x16x128xf32, #tpu.memory_space<vmem>>, vector<1x4x128xf32>
    %5 = vector.shape_cast %4 : vector<1x4x128xf32> to vector<4x128xf32>
    %c1_7 = arith.constant 1 : index
    %c0_8 = arith.constant 0 : index
    %c0_9 = arith.constant 0 : index
    %6 = vector.load %arg2[%c1_7, %c0_8, %c0_9] : memref<2x16x128xf32, #tpu.memory_space<vmem>>, vector<1x4x128xf32>
    %7 = vector.shape_cast %6 : vector<1x4x128xf32> to vector<4x128xf32>
    %8 = vector.broadcast %1 : vector<1x128xf32> to vector<4x128xf32>
    %9 = arith.mulf %8, %5 : vector<4x128xf32>
    %10 = vector.broadcast %3 : vector<1x128xf32> to vector<4x128xf32>
    %11 = arith.mulf %10, %7 : vector<4x128xf32>
    %12 = arith.subf %9, %11 : vector<4x128xf32>
    %13 = vector.broadcast %1 : vector<1x128xf32> to vector<4x128xf32>
    %14 = arith.mulf %13, %7 : vector<4x128xf32>
    %15 = vector.broadcast %3 : vector<1x128xf32> to vector<4x128xf32>
    %16 = arith.mulf %15, %5 : vector<4x128xf32>
    %17 = arith.addf %14, %16 : vector<4x128xf32>
    %c0_10 = arith.constant 0 : index
    %c1_11 = arith.constant 1 : index
    %c0_12 = arith.constant 0 : index
    %18 = vector.load %arg1[%c0_10, %c1_11, %c0_12] : memref<2x8x128xf32, #tpu.memory_space<vmem>>, vector<1x1x128xf32>
    %19 = vector.shape_cast %18 : vector<1x1x128xf32> to vector<1x128xf32>
    %c1_13 = arith.constant 1 : index
    %c1_14 = arith.constant 1 : index
    %c0_15 = arith.constant 0 : index
    %20 = vector.load %arg1[%c1_13, %c1_14, %c0_15] : memref<2x8x128xf32, #tpu.memory_space<vmem>>, vector<1x1x128xf32>
    %21 = vector.shape_cast %20 : vector<1x1x128xf32> to vector<1x128xf32>
    %c0_16 = arith.constant 0 : index
    %c4 = arith.constant 4 : index
    %c0_17 = arith.constant 0 : index
    %22 = vector.load %arg2[%c0_16, %c4, %c0_17] : memref<2x16x128xf32, #tpu.memory_space<vmem>>, vector<1x4x128xf32>
    %23 = vector.shape_cast %22 : vector<1x4x128xf32> to vector<4x128xf32>
    %c1_18 = arith.constant 1 : index
    %c4_19 = arith.constant 4 : index
    %c0_20 = arith.constant 0 : index
    %24 = vector.load %arg2[%c1_18, %c4_19, %c0_20] : memref<2x16x128xf32, #tpu.memory_space<vmem>>, vector<1x4x128xf32>
    %25 = vector.shape_cast %24 : vector<1x4x128xf32> to vector<4x128xf32>
    %26 = vector.broadcast %19 : vector<1x128xf32> to vector<4x128xf32>
    %27 = arith.mulf %26, %23 : vector<4x128xf32>
    %28 = vector.broadcast %21 : vector<1x128xf32> to vector<4x128xf32>
    %29 = arith.mulf %28, %25 : vector<4x128xf32>
    %30 = arith.subf %27, %29 : vector<4x128xf32>
    %31 = vector.broadcast %19 : vector<1x128xf32> to vector<4x128xf32>
    %32 = arith.mulf %31, %25 : vector<4x128xf32>
    %33 = vector.broadcast %21 : vector<1x128xf32> to vector<4x128xf32>
    %34 = arith.mulf %33, %23 : vector<4x128xf32>
    %35 = arith.addf %32, %34 : vector<4x128xf32>
    %36 = arith.addf %12, %30 : vector<4x128xf32>
    %37 = arith.addf %17, %35 : vector<4x128xf32>
    %c0_21 = arith.constant 0 : index
    %c2 = arith.constant 2 : index
    %c0_22 = arith.constant 0 : index
    %38 = vector.load %arg1[%c0_21, %c2, %c0_22] : memref<2x8x128xf32, #tpu.memory_space<vmem>>, vector<1x1x128xf32>
    %39 = vector.shape_cast %38 : vector<1x1x128xf32> to vector<1x128xf32>
    %c1_23 = arith.constant 1 : index
    %c2_24 = arith.constant 2 : index
    %c0_25 = arith.constant 0 : index
    %40 = vector.load %arg1[%c1_23, %c2_24, %c0_25] : memref<2x8x128xf32, #tpu.memory_space<vmem>>, vector<1x1x128xf32>
    %41 = vector.shape_cast %40 : vector<1x1x128xf32> to vector<1x128xf32>
    %c0_26 = arith.constant 0 : index
    %c8 = arith.constant 8 : index
    %c0_27 = arith.constant 0 : index
    %42 = vector.load %arg2[%c0_26, %c8, %c0_27] : memref<2x16x128xf32, #tpu.memory_space<vmem>>, vector<1x4x128xf32>
    %43 = vector.shape_cast %42 : vector<1x4x128xf32> to vector<4x128xf32>
    %c1_28 = arith.constant 1 : index
    %c8_29 = arith.constant 8 : index
    %c0_30 = arith.constant 0 : index
    %44 = vector.load %arg2[%c1_28, %c8_29, %c0_30] : memref<2x16x128xf32, #tpu.memory_space<vmem>>, vector<1x4x128xf32>
    %45 = vector.shape_cast %44 : vector<1x4x128xf32> to vector<4x128xf32>
    %46 = vector.broadcast %39 : vector<1x128xf32> to vector<4x128xf32>
    %47 = arith.mulf %46, %43 : vector<4x128xf32>
    %48 = vector.broadcast %41 : vector<1x128xf32> to vector<4x128xf32>
    %49 = arith.mulf %48, %45 : vector<4x128xf32>
    %50 = arith.subf %47, %49 : vector<4x128xf32>
    %51 = vector.broadcast %39 : vector<1x128xf32> to vector<4x128xf32>
    %52 = arith.mulf %51, %45 : vector<4x128xf32>
    %53 = vector.broadcast %41 : vector<1x128xf32> to vector<4x128xf32>
    %54 = arith.mulf %53, %43 : vector<4x128xf32>
    %55 = arith.addf %52, %54 : vector<4x128xf32>
    %56 = arith.addf %36, %50 : vector<4x128xf32>
    %57 = arith.addf %37, %55 : vector<4x128xf32>
    %c0_31 = arith.constant 0 : index
    %c3 = arith.constant 3 : index
    %c0_32 = arith.constant 0 : index
    %58 = vector.load %arg1[%c0_31, %c3, %c0_32] : memref<2x8x128xf32, #tpu.memory_space<vmem>>, vector<1x1x128xf32>
    %59 = vector.shape_cast %58 : vector<1x1x128xf32> to vector<1x128xf32>
    %c1_33 = arith.constant 1 : index
    %c3_34 = arith.constant 3 : index
    %c0_35 = arith.constant 0 : index
    %60 = vector.load %arg1[%c1_33, %c3_34, %c0_35] : memref<2x8x128xf32, #tpu.memory_space<vmem>>, vector<1x1x128xf32>
    %61 = vector.shape_cast %60 : vector<1x1x128xf32> to vector<1x128xf32>
    %c0_36 = arith.constant 0 : index
    %c12 = arith.constant 12 : index
    %c0_37 = arith.constant 0 : index
    %62 = vector.load %arg2[%c0_36, %c12, %c0_37] : memref<2x16x128xf32, #tpu.memory_space<vmem>>, vector<1x4x128xf32>
    %63 = vector.shape_cast %62 : vector<1x4x128xf32> to vector<4x128xf32>
    %c1_38 = arith.constant 1 : index
    %c12_39 = arith.constant 12 : index
    %c0_40 = arith.constant 0 : index
    %64 = vector.load %arg2[%c1_38, %c12_39, %c0_40] : memref<2x16x128xf32, #tpu.memory_space<vmem>>, vector<1x4x128xf32>
    %65 = vector.shape_cast %64 : vector<1x4x128xf32> to vector<4x128xf32>
    %66 = vector.broadcast %59 : vector<1x128xf32> to vector<4x128xf32>
    %67 = arith.mulf %66, %63 : vector<4x128xf32>
    %68 = vector.broadcast %61 : vector<1x128xf32> to vector<4x128xf32>
    %69 = arith.mulf %68, %65 : vector<4x128xf32>
    %70 = arith.subf %67, %69 : vector<4x128xf32>
    %71 = vector.broadcast %59 : vector<1x128xf32> to vector<4x128xf32>
    %72 = arith.mulf %71, %65 : vector<4x128xf32>
    %73 = vector.broadcast %61 : vector<1x128xf32> to vector<4x128xf32>
    %74 = arith.mulf %73, %63 : vector<4x128xf32>
    %75 = arith.addf %72, %74 : vector<4x128xf32>
    %76 = arith.addf %56, %70 : vector<4x128xf32>
    %77 = arith.addf %57, %75 : vector<4x128xf32>
    %c0_41 = arith.constant 0 : index
    %c0_42 = arith.constant 0 : index
    %c0_43 = arith.constant 0 : index
    %78 = vector.load %arg3[%c0_41, %c0_42, %c0_43] : memref<2x8x128xf32, #tpu.memory_space<vmem>>, vector<1x4x128xf32>
    %79 = vector.shape_cast %78 : vector<1x4x128xf32> to vector<4x128xf32>
    %80 = vector.shape_cast %76 : vector<4x128xf32> to vector<1x4x128xf32>
    tpu.vector_store %arg3[%c0_41, %c0_42, %c0_43], %80 {strides = array<i32>} : memref<2x8x128xf32, #tpu.memory_space<vmem>>, vector<1x4x128xf32>,
    %c1_44 = arith.constant 1 : index
    %c0_45 = arith.constant 0 : index
    %c0_46 = arith.constant 0 : index
    %81 = vector.load %arg3[%c1_44, %c0_45, %c0_46] : memref<2x8x128xf32, #tpu.memory_space<vmem>>, vector<1x4x128xf32>
    %82 = vector.shape_cast %81 : vector<1x4x128xf32> to vector<4x128xf32>
    %83 = vector.shape_cast %77 : vector<4x128xf32> to vector<1x4x128xf32>
    tpu.vector_store %arg3[%c1_44, %c0_45, %c0_46], %83 {strides = array<i32>} : memref<2x8x128xf32, #tpu.memory_space<vmem>>, vector<1x4x128xf32>,
    %c0_47 = arith.constant 0 : index
    %c4_48 = arith.constant 4 : index
    %c0_49 = arith.constant 0 : index
    %84 = vector.load %arg1[%c0_47, %c4_48, %c0_49] : memref<2x8x128xf32, #tpu.memory_space<vmem>>, vector<1x1x128xf32>
    %85 = vector.shape_cast %84 : vector<1x1x128xf32> to vector<1x128xf32>
    %c1_50 = arith.constant 1 : index
    %c4_51 = arith.constant 4 : index
    %c0_52 = arith.constant 0 : index
    %86 = vector.load %arg1[%c1_50, %c4_51, %c0_52] : memref<2x8x128xf32, #tpu.memory_space<vmem>>, vector<1x1x128xf32>
    %87 = vector.shape_cast %86 : vector<1x1x128xf32> to vector<1x128xf32>
    %c0_53 = arith.constant 0 : index
    %c0_54 = arith.constant 0 : index
    %c0_55 = arith.constant 0 : index
    %88 = vector.load %arg2[%c0_53, %c0_54, %c0_55] : memref<2x16x128xf32, #tpu.memory_space<vmem>>, vector<1x4x128xf32>
    %89 = vector.shape_cast %88 : vector<1x4x128xf32> to vector<4x128xf32>
    %c1_56 = arith.constant 1 : index
    %c0_57 = arith.constant 0 : index
    %c0_58 = arith.constant 0 : index
    %90 = vector.load %arg2[%c1_56, %c0_57, %c0_58] : memref<2x16x128xf32, #tpu.memory_space<vmem>>, vector<1x4x128xf32>
    %91 = vector.shape_cast %90 : vector<1x4x128xf32> to vector<4x128xf32>
    %92 = vector.broadcast %85 : vector<1x128xf32> to vector<4x128xf32>
    %93 = arith.mulf %92, %89 : vector<4x128xf32>
    %94 = vector.broadcast %87 : vector<1x128xf32> to vector<4x128xf32>
    %95 = arith.mulf %94, %91 : vector<4x128xf32>
    %96 = arith.subf %93, %95 : vector<4x128xf32>
    %97 = vector.broadcast %85 : vector<1x128xf32> to vector<4x128xf32>
    %98 = arith.mulf %97, %91 : vector<4x128xf32>
    %99 = vector.broadcast %87 : vector<1x128xf32> to vector<4x128xf32>
    %100 = arith.mulf %99, %89 : vector<4x128xf32>
    %101 = arith.addf %98, %100 : vector<4x128xf32>
    %c0_59 = arith.constant 0 : index
    %c5 = arith.constant 5 : index
    %c0_60 = arith.constant 0 : index
    %102 = vector.load %arg1[%c0_59, %c5, %c0_60] : memref<2x8x128xf32, #tpu.memory_space<vmem>>, vector<1x1x128xf32>
    %103 = vector.shape_cast %102 : vector<1x1x128xf32> to vector<1x128xf32>
    %c1_61 = arith.constant 1 : index
    %c5_62 = arith.constant 5 : index
    %c0_63 = arith.constant 0 : index
    %104 = vector.load %arg1[%c1_61, %c5_62, %c0_63] : memref<2x8x128xf32, #tpu.memory_space<vmem>>, vector<1x1x128xf32>
    %105 = vector.shape_cast %104 : vector<1x1x128xf32> to vector<1x128xf32>
    %c0_64 = arith.constant 0 : index
    %c4_65 = arith.constant 4 : index
    %c0_66 = arith.constant 0 : index
    %106 = vector.load %arg2[%c0_64, %c4_65, %c0_66] : memref<2x16x128xf32, #tpu.memory_space<vmem>>, vector<1x4x128xf32>
    %107 = vector.shape_cast %106 : vector<1x4x128xf32> to vector<4x128xf32>
    %c1_67 = arith.constant 1 : index
    %c4_68 = arith.constant 4 : index
    %c0_69 = arith.constant 0 : index
    %108 = vector.load %arg2[%c1_67, %c4_68, %c0_69] : memref<2x16x128xf32, #tpu.memory_space<vmem>>, vector<1x4x128xf32>
    %109 = vector.shape_cast %108 : vector<1x4x128xf32> to vector<4x128xf32>
    %110 = vector.broadcast %103 : vector<1x128xf32> to vector<4x128xf32>
    %111 = arith.mulf %110, %107 : vector<4x128xf32>
    %112 = vector.broadcast %105 : vector<1x128xf32> to vector<4x128xf32>
    %113 = arith.mulf %112, %109 : vector<4x128xf32>
    %114 = arith.subf %111, %113 : vector<4x128xf32>
    %115 = vector.broadcast %103 : vector<1x128xf32> to vector<4x128xf32>
    %116 = arith.mulf %115, %109 : vector<4x128xf32>
    %117 = vector.broadcast %105 : vector<1x128xf32> to vector<4x128xf32>
    %118 = arith.mulf %117, %107 : vector<4x128xf32>
    %119 = arith.addf %116, %118 : vector<4x128xf32>
    %120 = arith.addf %96, %114 : vector<4x128xf32>
    %121 = arith.addf %101, %119 : vector<4x128xf32>
    %c0_70 = arith.constant 0 : index
    %c6 = arith.constant 6 : index
    %c0_71 = arith.constant 0 : index
    %122 = vector.load %arg1[%c0_70, %c6, %c0_71] : memref<2x8x128xf32, #tpu.memory_space<vmem>>, vector<1x1x128xf32>
    %123 = vector.shape_cast %122 : vector<1x1x128xf32> to vector<1x128xf32>
    %c1_72 = arith.constant 1 : index
    %c6_73 = arith.constant 6 : index
    %c0_74 = arith.constant 0 : index
    %124 = vector.load %arg1[%c1_72, %c6_73, %c0_74] : memref<2x8x128xf32, #tpu.memory_space<vmem>>, vector<1x1x128xf32>
    %125 = vector.shape_cast %124 : vector<1x1x128xf32> to vector<1x128xf32>
    %c0_75 = arith.constant 0 : index
    %c8_76 = arith.constant 8 : index
    %c0_77 = arith.constant 0 : index
    %126 = vector.load %arg2[%c0_75, %c8_76, %c0_77] : memref<2x16x128xf32, #tpu.memory_space<vmem>>, vector<1x4x128xf32>
    %127 = vector.shape_cast %126 : vector<1x4x128xf32> to vector<4x128xf32>
    %c1_78 = arith.constant 1 : index
    %c8_79 = arith.constant 8 : index
    %c0_80 = arith.constant 0 : index
    %128 = vector.load %arg2[%c1_78, %c8_79, %c0_80] : memref<2x16x128xf32, #tpu.memory_space<vmem>>, vector<1x4x128xf32>
    %129 = vector.shape_cast %128 : vector<1x4x128xf32> to vector<4x128xf32>
    %130 = vector.broadcast %123 : vector<1x128xf32> to vector<4x128xf32>
    %131 = arith.mulf %130, %127 : vector<4x128xf32>
    %132 = vector.broadcast %125 : vector<1x128xf32> to vector<4x128xf32>
    %133 = arith.mulf %132, %129 : vector<4x128xf32>
    %134 = arith.subf %131, %133 : vector<4x128xf32>
    %135 = vector.broadcast %123 : vector<1x128xf32> to vector<4x128xf32>
    %136 = arith.mulf %135, %129 : vector<4x128xf32>
    %137 = vector.broadcast %125 : vector<1x128xf32> to vector<4x128xf32>
    %138 = arith.mulf %137, %127 : vector<4x128xf32>
    %139 = arith.addf %136, %138 : vector<4x128xf32>
    %140 = arith.addf %120, %134 : vector<4x128xf32>
    %141 = arith.addf %121, %139 : vector<4x128xf32>
    %c0_81 = arith.constant 0 : index
    %c7 = arith.constant 7 : index
    %c0_82 = arith.constant 0 : index
    %142 = vector.load %arg1[%c0_81, %c7, %c0_82] : memref<2x8x128xf32, #tpu.memory_space<vmem>>, vector<1x1x128xf32>
    %143 = vector.shape_cast %142 : vector<1x1x128xf32> to vector<1x128xf32>
    %c1_83 = arith.constant 1 : index
    %c7_84 = arith.constant 7 : index
    %c0_85 = arith.constant 0 : index
    %144 = vector.load %arg1[%c1_83, %c7_84, %c0_85] : memref<2x8x128xf32, #tpu.memory_space<vmem>>, vector<1x1x128xf32>
    %145 = vector.shape_cast %144 : vector<1x1x128xf32> to vector<1x128xf32>
    %c0_86 = arith.constant 0 : index
    %c12_87 = arith.constant 12 : index
    %c0_88 = arith.constant 0 : index
    %146 = vector.load %arg2[%c0_86, %c12_87, %c0_88] : memref<2x16x128xf32, #tpu.memory_space<vmem>>, vector<1x4x128xf32>
    %147 = vector.shape_cast %146 : vector<1x4x128xf32> to vector<4x128xf32>
    %c1_89 = arith.constant 1 : index
    %c12_90 = arith.constant 12 : index
    %c0_91 = arith.constant 0 : index
    %148 = vector.load %arg2[%c1_89, %c12_90, %c0_91] : memref<2x16x128xf32, #tpu.memory_space<vmem>>, vector<1x4x128xf32>
    %149 = vector.shape_cast %148 : vector<1x4x128xf32> to vector<4x128xf32>
    %150 = vector.broadcast %143 : vector<1x128xf32> to vector<4x128xf32>
    %151 = arith.mulf %150, %147 : vector<4x128xf32>
    %152 = vector.broadcast %145 : vector<1x128xf32> to vector<4x128xf32>
    %153 = arith.mulf %152, %149 : vector<4x128xf32>
    %154 = arith.subf %151, %153 : vector<4x128xf32>
    %155 = vector.broadcast %143 : vector<1x128xf32> to vector<4x128xf32>
    %156 = arith.mulf %155, %149 : vector<4x128xf32>
    %157 = vector.broadcast %145 : vector<1x128xf32> to vector<4x128xf32>
    %158 = arith.mulf %157, %147 : vector<4x128xf32>
    %159 = arith.addf %156, %158 : vector<4x128xf32>
    %160 = arith.addf %140, %154 : vector<4x128xf32>
    %161 = arith.addf %141, %159 : vector<4x128xf32>
    %c0_92 = arith.constant 0 : index
    %c4_93 = arith.constant 4 : index
    %c0_94 = arith.constant 0 : index
    %162 = vector.load %arg3[%c0_92, %c4_93, %c0_94] : memref<2x8x128xf32, #tpu.memory_space<vmem>>, vector<1x4x128xf32>
    %163 = vector.shape_cast %162 : vector<1x4x128xf32> to vector<4x128xf32>
    %164 = vector.shape_cast %160 : vector<4x128xf32> to vector<1x4x128xf32>
    tpu.vector_store %arg3[%c0_92, %c4_93, %c0_94], %164 {strides = array<i32>} : memref<2x8x128xf32, #tpu.memory_space<vmem>>, vector<1x4x128xf32>,
    %c1_95 = arith.constant 1 : index
    %c4_96 = arith.constant 4 : index
    %c0_97 = arith.constant 0 : index
    %165 = vector.load %arg3[%c1_95, %c4_96, %c0_97] : memref<2x8x128xf32, #tpu.memory_space<vmem>>, vector<1x4x128xf32>
    %166 = vector.shape_cast %165 : vector<1x4x128xf32> to vector<4x128xf32>
    %167 = vector.shape_cast %161 : vector<4x128xf32> to vector<1x4x128xf32>
    tpu.vector_store %arg3[%c1_95, %c4_96, %c0_97], %167 {strides = array<i32>} : memref<2x8x128xf32, #tpu.memory_space<vmem>>, vector<1x4x128xf32>,
    return
  }
  func.func @transform_0(%arg0: i32) -> (i32, i32, i32) {
    %c0_i32 = arith.constant 0 : i32
    %c0_i32_0 = arith.constant 0 : i32
    %c0_i32_1 = arith.constant 0 : i32
    return %c0_i32, %c0_i32_0, %arg0 : i32, i32, i32
  }
  func.func @transform_1(%arg0: i32) -> (i32, i32, i32) {
    %c0_i32 = arith.constant 0 : i32
    %c0_i32_0 = arith.constant 0 : i32
    %c0_i32_1 = arith.constant 0 : i32
    return %c0_i32, %c0_i32_0, %arg0 : i32, i32, i32
  }
  func.func @transform_2(%arg0: i32) -> (i32, i32, i32) {
    %c0_i32 = arith.constant 0 : i32
    %c0_i32_0 = arith.constant 0 : i32
    %c0_i32_1 = arith.constant 0 : i32
    return %c0_i32, %c0_i32_0, %arg0 : i32, i32, i32
  }
}

</mosaic_0001>

<bundles_post_ra>
// kernel: reverse.0
= control target key start
LH: loop header
LB: loop body
LE: loop exit
PB: predicated region body
PF: predicated region fallthrough
CT: control target
= control target key end

     0   :  { %v72_v3 = vlaneseq  ;;  %v65_v6 = vld [vmem:[#allocation0 + $0x7] ss:$-1 sm:$0xff]  ;;  %v79_v8 = vld [vmem:[#allocation0 + $0x17] ss:$-1 sm:$0xff]  ;;  %s331_s0 = inlined_call_operand.vmem [shape: f32[2,4,16,7], index: 0, kind: input, shape index: {}]   ;;  %s332_s1 = inlined_call_operand.vmem [shape: f32[2,4,16,7], index: 1, kind: output, shape index: {}]  }
   0x1   :  { %v45_v0 = vld [vmem:[%s331_s0] sm:$0xff]  ;;  %v47_v1 = vld [vmem:[%s331_s0 + $0x8] sm:$0xff]  ;;  %v49_v2 = vld [vmem:[%s331_s0 + $0x10] sm:$0xff]  ;;  %v66_v12 = vrot.slane %v65_v6, 1  ;;  %v80_v13 = vrot.slane %v79_v8, 1 }
   0x2   :  { %46 = vst [vmem:[#allocation0 + $0x8] sm:$0xff] %v45_v0  ;;  %v51_v4 = vld [vmem:[%s331_s0 + $0x18] sm:$0xff]  ;;  %v53_v5 = vld [vmem:[%s331_s0 + $0x20] sm:$0xff]  ;;  %v55_v7 = vld [vmem:[%s331_s0 + $0x28] sm:$0xff]  ;;  %v73_v10 = vshrl.u32 %v72_v3, 7 }
   0x3   :  { %48 = vst [vmem:[#allocation0 + $0x18] sm:$0xff] %v47_v1  ;;  %v57_v9 = vld [vmem:[%s331_s0 + $0x30] sm:$0xff]  ;;  %v59_v11 = vld [vmem:[%s331_s0 + $0x38] sm:$0xff]  ;;  %v93_v14 = vld [vmem:[#allocation0 + $0x27] ss:$-1 sm:$0xff] }
   0x4   :  { %50 = vst [vmem:[#allocation0 + $0x28] sm:$0xff] %v49_v2  ;;  %vm74_vm0 = vcmp.lt.s32.totalorder %v73_v10, 7  ;;  %v107_v16 = vld [vmem:[#allocation0 + $0x37] ss:$-1 sm:$0xff]  ;;  %v94_v19 = vrot.slane %v93_v14, 1 }
   0x5   :  { %52 = vst [vmem:[#allocation0 + $0x38] sm:$0xff] %v51_v4  ;;  %v121_v22 = vld [vmem:[#allocation0 + $0x47] ss:$-1 sm:$0xff]  ;;  %v108_v24 = vrot.slane %v107_v16, 1  ;;  %v135_v28 = vld [vmem:[#allocation0 + $0x57] ss:$-1 sm:$0xff] }
   0x6   :  { %54 = vst [vmem:[#allocation0 + $0x48] sm:$0xff] %v53_v5  ;;  %v122_v29 = vrot.slane %v121_v22, 1  ;;  %v149_v32 = vld [vmem:[#allocation0 + $0x67] ss:$-1 sm:$0xff]  ;;  %v136_v33 = vrot.slane %v135_v28, 1 }
   0x7   :  { %56 = vst [vmem:[#allocation0 + $0x58] sm:$0xff] %v55_v7  ;;  %v163_v36 = vld [vmem:[#allocation0 + $0x77] ss:$-1 sm:$0xff]  ;;  %v150_v37 = vrot.slane %v149_v32, 1 }
   0x8   :  { %58 = vst [vmem:[#allocation0 + $0x68] sm:$0xff] %v57_v9  ;;  %v164_v40 = vrot.slane %v163_v36, 1 }
   0x9   :  { %60 = vst [vmem:[#allocation0 + $0x78] sm:$0xff] %v59_v11  ;;  %v70_v15 = vld [vmem:[#allocation0 + $0xf] ss:$-1 sm:$0xff] }
   0xa   :  { %67 = vst [vmem:[#allocation1] sm:$0xff] %v66_v12  ;;  %v71_v17 = vrot.slane %v70_v15, 1  ;;  %v84_v18 = vld [vmem:[#allocation0 + $0x1f] ss:$-1 sm:$0xff] }
   0xb   :  { %81 = vst [vmem:[#allocation1 + $0x8] sm:$0xff] %v80_v13  ;;  %v85_v20 = vrot.slane %v84_v18, 1  ;;  %v98_v21 = vld [vmem:[#allocation0 + $0x2f] ss:$-1 sm:$0xff] }
   0xc   :  { %75 = vst.msk [vmem:[#allocation1] sm:$0xff] %vm74_vm0, %v71_v17  ;;  %v99_v23 = vrot.slane %v98_v21, 1  ;;  %v112_v25 = vld [vmem:[#allocation0 + $0x3f] ss:$-1 sm:$0xff] }
   0xd   :  { %89 = vst.msk [vmem:[#allocation1 + $0x8] sm:$0xff] %vm74_vm0, %v85_v20  ;;  %v113_v26 = vrot.slane %v112_v25, 1  ;;  %v126_v27 = vld [vmem:[#allocation0 + $0x4f] ss:$-1 sm:$0xff] }
   0xe   :  { %95 = vst [vmem:[#allocation1 + $0x10] sm:$0xff] %v94_v19  ;;  %v140_v30 = vld [vmem:[#allocation0 + $0x5f] ss:$-1 sm:$0xff]  ;;  %v127_v31 = vrot.slane %v126_v27, 1 }
   0xf   :  { %103 = vst.msk [vmem:[#allocation1 + $0x10] sm:$0xff] %vm74_vm0, %v99_v23  ;;  %v154_v34 = vld [vmem:[#allocation0 + $0x6f] ss:$-1 sm:$0xff]  ;;  %v141_v35 = vrot.slane %v140_v30, 1 }
  0x10   :  { %109 = vst [vmem:[#allocation1 + $0x18] sm:$0xff] %v108_v24  ;;  %v168_v38 = vld [vmem:[#allocation0 + $0x7f] ss:$-1 sm:$0xff]  ;;  %v155_v39 = vrot.slane %v154_v34, 1 }
  0x11   :  { %117 = vst.msk [vmem:[#allocation1 + $0x18] sm:$0xff] %vm74_vm0, %v113_v26  ;;  %v169_v41 = vrot.slane %v168_v38, 1 }
  0x12   :  { %123 = vst [vmem:[#allocation1 + $0x20] sm:$0xff] %v122_v29 }
  0x13   :  { %131 = vst.msk [vmem:[#allocation1 + $0x20] sm:$0xff] %vm74_vm0, %v127_v31  ;;  %v216_v42 = vld [vmem:[#allocation1] sm:$0xff] }
  0x14   :  { %137 = vst [vmem:[#allocation1 + $0x28] sm:$0xff] %v136_v33  ;;  %v218_v43 = vld [vmem:[#allocation1 + $0x8] sm:$0xff] }
  0x15   :  { %145 = vst.msk [vmem:[#allocation1 + $0x28] sm:$0xff] %vm74_vm0, %v141_v35 }
  0x16   :  { %151 = vst [vmem:[#allocation1 + $0x30] sm:$0xff] %v150_v37  ;;  %v220_v44 = vld [vmem:[#allocation1 + $0x10] sm:$0xff] }
  0x17   :  { %159 = vst.msk [vmem:[#allocation1 + $0x30] sm:$0xff] %vm74_vm0, %v155_v39 }
  0x18   :  { %165 = vst [vmem:[#allocation1 + $0x38] sm:$0xff] %v164_v40  ;;  %v222_v45 = vld [vmem:[#allocation1 + $0x18] sm:$0xff] }
  0x19   :  { %173 = vst.msk [vmem:[#allocation1 + $0x38] sm:$0xff] %vm74_vm0, %v169_v41 }
  0x1a   :  { %217 = vst [vmem:[%s332_s1] sm:$0xff] %v216_v42  ;;  %v224_v46 = vld [vmem:[#allocation1 + $0x20] sm:$0xff] }
  0x1b   :  { %219 = vst [vmem:[%s332_s1 + $0x8] sm:$0xff] %v218_v43 }
  0x1c   :  { %221 = vst [vmem:[%s332_s1 + $0x10] sm:$0xff] %v220_v44  ;;  %v226_v47 = vld [vmem:[#allocation1 + $0x28] sm:$0xff] }
  0x1d   :  { %223 = vst [vmem:[%s332_s1 + $0x18] sm:$0xff] %v222_v45 }
  0x1e   :  { %225 = vst [vmem:[%s332_s1 + $0x20] sm:$0xff] %v224_v46  ;;  %v228_v48 = vld [vmem:[#allocation1 + $0x30] sm:$0xff] }
  0x1f   :  { %227 = vst [vmem:[%s332_s1 + $0x28] sm:$0xff] %v226_v47 }
  0x20   :  { %229 = vst [vmem:[%s332_s1 + $0x30] sm:$0xff] %v228_v48  ;;  %v230_v49 = vld [vmem:[#allocation1 + $0x38] sm:$0xff] }
  0x21   :  { %231 = vst [vmem:[%s332_s1 + $0x38] sm:$0xff] %v230_v49 }

// kernel: _spectral_conv2d_forward.1
= control target key start
LH: loop header
LB: loop body
LE: loop exit
PB: predicated region body
PF: predicated region fallthrough
CT: control target
= control target key end

     0   :  { %s287_s0 = inlined_call_operand.vmem [shape: f32[2,8,128], index: 0, kind: input, shape index: {}]   ;;  %s288_s1 = inlined_call_operand.vmem [shape: f32[2,16,128], index: 1, kind: input, shape index: {}]   ;;  %s289_s2 = inlined_call_operand.vmem [shape: f32[2,8,128], index: 2, kind: output, shape index: {}]  }
   0x1   :  { %v14_v0 = vld [vmem:[%s288_s1] sm:$0xf]  ;;  %v131_v1 = vld [vmem:[%s288_s1 + $0x10] sm:$0xf]  ;;  %v149_v3 = vld [vmem:[%s287_s0 + $0x8] ss:$0 sm:$0xff] }
   0x2   :  { %v148_v2 = vld [vmem:[%s287_s0] ss:$0 sm:$0xff]  ;;  %v27_v4 = vld [vmem:[%s288_s1 + $0x4] sm:$0xf]  ;;  %v20_v6 = vmul.f32 %v149_v3, %v131_v1  ;;  %v133_v7 = vld [vmem:[%s288_s1 + $0x14] sm:$0xf]  ;;  %v23_v11 = vmul.f32 %v149_v3, %v14_v0 }
   0x3   :  { %v18_v5 = vmul.f32 %v148_v2, %v14_v0  ;;  %v150_v8 = vld [vmem:[%s287_s0 + $0x1] ss:$0 sm:$0xff]  ;;  %v151_v9 = vld [vmem:[%s287_s0 + $0x9] ss:$0 sm:$0xff]  ;;  %v22_v10 = vmul.f32 %v148_v2, %v131_v1  ;;  %v135_v16 = vld [vmem:[%s288_s1 + $0x18] sm:$0xf] }
   0x4   :  { %v41_v12 = vld [vmem:[%s288_s1 + $0x8] sm:$0xf]  ;;  %v30_v14 = vmul.f32 %v150_v8, %v27_v4  ;;  %v32_v15 = vmul.f32 %v151_v9, %v133_v7  ;;  %v152_v17 = vld [vmem:[%s287_s0 + $0x2] ss:$0 sm:$0xff]  ;;  %v55_v19 = vld [vmem:[%s288_s1 + $0xc] sm:$0xf]  ;;  %v34_v21 = vmul.f32 %v150_v8, %v133_v7  ;;  %v35_v22 = vmul.f32 %v151_v9, %v27_v4 }
   0x5   :  { %v21_v13 = vsub.f32 %v18_v5, %v20_v6  ;;  %v153_v18 = vld [vmem:[%s287_s0 + $0xa] ss:$0 sm:$0xff]  ;;  %v24_v20 = vadd.f32 %v23_v11, %v22_v10  ;;  %v44_v24 = vmul.f32 %v152_v17, %v41_v12  ;;  %v137_v26 = vld [vmem:[%s288_s1 + $0x1c] sm:$0xf]  ;;  %v154_v27 = vld [vmem:[%s287_s0 + $0x3] ss:$0 sm:$0xff]  ;;  %v48_v29 = vmul.f32 %v152_v17, %v135_v16 }
   0x6   :  { %v33_v23 = vsub.f32 %v30_v14, %v32_v15  ;;  %v46_v25 = vmul.f32 %v153_v18, %v135_v16  ;;  %v155_v28 = vld [vmem:[%s287_s0 + $0xb] ss:$0 sm:$0xff]  ;;  %v36_v30 = vadd.f32 %v35_v22, %v34_v21  ;;  %v49_v31 = vmul.f32 %v153_v18, %v41_v12  ;;  %v72_v32 = vld [vmem:[%s288_s1] sm:$0xf]  ;;  %v140_v37 = vld [vmem:[%s288_s1 + $0x10] sm:$0xf] }
   0x7   :  { %v58_v35 = vmul.f32 %v154_v27, %v55_v19  ;;  %v60_v36 = vmul.f32 %v155_v28, %v137_v26  ;;  %v156_v38 = vld [vmem:[%s287_s0 + $0x4] ss:$0 sm:$0xff]  ;;  %v157_v39 = vld [vmem:[%s287_s0 + $0xc] ss:$0 sm:$0xff]  ;;  %v62_v42 = vmul.f32 %v154_v27, %v137_v26  ;;  %v63_v43 = vmul.f32 %v155_v28, %v55_v19  ;;  %v142_v49 = vld [vmem:[%s288_s1 + $0x14] sm:$0xf] }
   0x8   :  { %v37_v33 = vadd.f32 %v33_v23, %v21_v13  ;;  %v47_v34 = vsub.f32 %v44_v24, %v46_v25  ;;  %v38_v40 = vadd.f32 %v36_v30, %v24_v20  ;;  %v50_v41 = vadd.f32 %v49_v31, %v48_v29  ;;  %v84_v44 = vld [vmem:[%s288_s1 + $0x4] sm:$0xf]  ;;  %v159_v51 = vld [vmem:[%s287_s0 + $0xd] ss:$0 sm:$0xff]  ;;  %v98_v54 = vld [vmem:[%s288_s1 + $0x8] sm:$0xf] }
   0x9   :  { %v61_v46 = vsub.f32 %v58_v35, %v60_v36  ;;  %v75_v47 = vmul.f32 %v156_v38, %v72_v32  ;;  %v77_v48 = vmul.f32 %v157_v39, %v140_v37  ;;  %v158_v50 = vld [vmem:[%s287_s0 + $0x5] ss:$0 sm:$0xff]  ;;  %v64_v53 = vadd.f32 %v63_v43, %v62_v42  ;;  %v144_v61 = vld [vmem:[%s288_s1 + $0x18] sm:$0xf]  ;;  %v160_v62 = vld [vmem:[%s287_s0 + $0x6] ss:$0 sm:$0xff] }
   0xa   :  { %v51_v45 = vadd.f32 %v47_v34, %v37_v33  ;;  %v52_v52 = vadd.f32 %v50_v41, %v38_v40  ;;  %v79_v55 = vmul.f32 %v156_v38, %v140_v37  ;;  %v80_v56 = vmul.f32 %v157_v39, %v72_v32  ;;  %v161_v63 = vld [vmem:[%s287_s0 + $0xe] ss:$0 sm:$0xff]  ;;  %v146_v8 = vld [vmem:[%s288_s1 + $0x1c] sm:$0xf]  ;;  %v162_v9 = vld [vmem:[%s287_s0 + $0x7] ss:$0 sm:$0xff] }
   0xb   :  { %v78_v58 = vsub.f32 %v75_v47, %v77_v48  ;;  %v87_v59 = vmul.f32 %v158_v50, %v84_v44  ;;  %v89_v60 = vmul.f32 %v159_v51, %v142_v49  ;;  %v112_v1 = vld [vmem:[%s288_s1 + $0xc] sm:$0xf]  ;;  %v91_v3 = vmul.f32 %v158_v50, %v142_v49 }
   0xc   :  { %v65_v57 = vadd.f32 %v61_v46, %v51_v45  ;;  %v66_v0 = vadd.f32 %v64_v53, %v52_v52  ;;  %v81_v2 = vadd.f32 %v80_v56, %v79_v55  ;;  %v92_v4 = vmul.f32 %v159_v51, %v84_v44  ;;  %v163_v11 = vld [vmem:[%s287_s0 + $0xf] ss:$0 sm:$0xff] }
   0xd   :  { %v90_v5 = vsub.f32 %v87_v59, %v89_v60  ;;  %v101_v6 = vmul.f32 %v160_v62, %v98_v54  ;;  %v103_v7 = vmul.f32 %v161_v63, %v144_v61  ;;  %v105_v10 = vmul.f32 %v160_v62, %v144_v61 }
   0xe   :  { %67 = vst [vmem:[%s289_s2] sm:$0xf] %v65_v57  ;;  %v93_v12 = vadd.f32 %v92_v4, %v91_v3  ;;  %v106_v13 = vmul.f32 %v161_v63, %v98_v54  ;;  %v115_v16 = vmul.f32 %v162_v9, %v112_v1  ;;  %v119_v17 = vmul.f32 %v162_v9, %v146_v8 }
   0xf   :  { %138 = vst [vmem:[%s289_s2 + $0x8] sm:$0xf] %v66_v0  ;;  %v94_v14 = vadd.f32 %v90_v5, %v78_v58  ;;  %v104_v15 = vsub.f32 %v101_v6, %v103_v7  ;;  %v117_v18 = vmul.f32 %v163_v11, %v146_v8  ;;  %v120_v21 = vmul.f32 %v163_v11, %v112_v1 }
  0x10   :  { %v95_v19 = vadd.f32 %v93_v12, %v81_v2  ;;  %v107_v20 = vadd.f32 %v106_v13, %v105_v10 }
  0x11   :  { %v108_v22 = vadd.f32 %v104_v15, %v94_v14  ;;  %v118_v23 = vsub.f32 %v115_v16, %v117_v18  ;;  %v121_v25 = vadd.f32 %v120_v21, %v119_v17 }
  0x12   :  { %v109_v24 = vadd.f32 %v107_v20, %v95_v19 }
  0x13   :  { %v122_v26 = vadd.f32 %v118_v23, %v108_v22 }
  0x14   :  { %v123_v27 = vadd.f32 %v121_v25, %v109_v24 }
  0x15   :  { %124 = vst [vmem:[%s289_s2 + $0x4] sm:$0xf] %v122_v26 }
  0x16   :  { %147 = vst [vmem:[%s289_s2 + $0xc] sm:$0xf] %v123_v27 }

</bundles_post_ra>
